<compile_context>
chip_gen: v7x
topology: tpu7x:2x2x1
jax: 0.10.0
libtpu: 0.0.40
codegen_flags: <defaults>
</compile_context>

<pallas_src>
import functools

import jax
import jax.numpy as jnp
import numpy as np
from jax.experimental import pallas as pl
from jax.experimental.pallas import tpu as pltpu

# (fan_in, fan_out) per layer, matching nn.Linear(8,6) -> (6,4) -> (4,2) -> (2,1)
LAYER_DIMS = ((8, 6), (6, 4), (4, 2), (2, 1))


def _param_offsets():
    offs, o = [], 0
    for fin, fout in LAYER_DIMS:
        w_off = o
        o += fin * fout
        b_off = o
        o += fout
        offs.append((w_off, b_off))
    return tuple(offs), o


_OFFS, _NPARAMS = _param_offsets()


def _round_up(n, m):
    return ((n + m - 1) // m) * m


def mlp_kernel(p_ref, x_ref, o_ref, *, tanh_dtype):
    """p_ref: flat f32[95] in SMEM (folded W row-major (out,in), then folded b).
    x_ref: (8, bt_rows, 128) f32 block in VMEM (feature-major, lane/sublane dense).
    o_ref: (bt_rows, 128) f32 block in VMEM."""
    # Per-feature activations as dense (bt_rows, 128) slabs (full vregs).
    acts = [x_ref[k] for k in range(LAYER_DIMS[0][0])]
    f32_tanh = jnp.dtype(tanh_dtype) == jnp.dtype(jnp.float32)

    for (fin, fout), (w_off, b_off) in zip(LAYER_DIMS, _OFFS):
        new_acts = []
        for n in range(fout):
            # u_n = sum_k W'[n,k] * h_k + b'_n  (scalar-broadcast madds on the VPU)
            acc = acts[0] * p_ref[w_off + n * fin] + p_ref[b_off + n]
            for k in range(1, fin):
                acc = acc + acts[k] * p_ref[w_off + n * fin + k]
            # Folded sigmoid: the hidden activation is just tanh(u); sigmoid's
            # 0.5*t + 0.5 affine is pre-folded into the NEXT layer's W', b'.
            if f32_tanh:
                t = jnp.tanh(acc)
            else:
                t = jnp.tanh(acc.astype(tanh_dtype)).astype(jnp.float32)
            new_acts.append(t)
        acts = new_acts

    # Final layer: undo the folding -> sigmoid(z4) = 0.5*tanh(0.5*z4) + 0.5.
    o_ref[...] = (acts[0] * 0.5 + 0.5).astype(o_ref.dtype)


def _pack_folded_params(params):
    """Fold sigmoid's 0.5*t+0.5 and tanh's 0.5 pre-scale into the 95 scalars
    (wrapper-side, negligible cost — no large-tensor XLA op is added)."""
    flats = []
    for li, (w, b) in enumerate(params):
        w = jnp.asarray(w, jnp.float32)
        b = jnp.asarray(b, jnp.float32)
        if li == 0:
            wf = 0.5 * w                                   # u1 = 0.5 * z1
            bf = 0.5 * b
        else:
            wf = 0.25 * w                                  # u_l = 0.5*z_l with h = 0.5*t + 0.5 folded
            bf = 0.5 * b + 0.25 * jnp.sum(w, axis=1)
        flats.append(jnp.concatenate([wf.reshape(-1), bf.reshape(-1)]))
    flat = jnp.concatenate(flats)
    assert flat.shape[0] == _NPARAMS
    return flat


def mlp_forward(x, params, *, max_tile_rows=1024, tanh_dtype=jnp.float32):
    """x: (B, 8). params: list of (W (out,in), b (out,)) for the 4 layers (unfolded).
    Returns (B, 1) float32, identical to the PyTorch forward."""
    B, F = x.shape
    assert F == LAYER_DIMS[0][0]

    flat_params = _pack_folded_params(params)

    # One 128-lane "row" = 128 samples.
    n_rows = pl.cdiv(B, 128)
    if n_rows <= 8:
        # Tiny batch: one full-extent block (no 8-row divisibility required).
        bt_rows, n_steps = max(n_rows, 1), 1
    else:
        # >=2 grid steps (v7x: 2 TensorCores), <= ~4 MiB input block per step,
        # block rows a multiple of 8, padding bounded to < one tile.
        n_steps = max(2, pl.cdiv(n_rows, max_tile_rows))
        bt_rows = _round_up(pl.cdiv(n_rows, n_steps), 8)
        n_steps = pl.cdiv(n_rows, bt_rows)
    n_rows_pad = n_steps * bt_rows
    B_pad = n_rows_pad * 128

    # Relayout to feature-major, sublane-dense (8, n_rows_pad, 128).
    # TODO(synk): this transpose is one extra HBM read+write of the input; a
    # producer that can emit feature-major batches should feed that layout
    # directly and skip this step.
    xt = jnp.pad(x.astype(jnp.float32), ((0, B_pad - B), (0, 0)))
    xt = xt.T.reshape(F, n_rows_pad, 128)

    out = pl.pallas_call(
        functools.partial(mlp_kernel, tanh_dtype=tanh_dtype),
        out_shape=jax.ShapeDtypeStruct((n_rows_pad, 128), jnp.float32),
        grid=(n_steps,),
        in_specs=[
            # 95 packed scalars, resident in SMEM (one tiny transfer).
            pl.BlockSpec(memory_space=pltpu.MemorySpace.SMEM),
            # (8, bt_rows, 128) feature-major blocks, auto double-buffered.
            pl.BlockSpec((F, bt_rows, 128), lambda i: (0, i, 0)),
        ],
        out_specs=pl.BlockSpec((bt_rows, 128), lambda i: (i, 0)),
        compiler_params=pltpu.CompilerParams(
            dimension_semantics=("parallel",),   # shard batch rows across TCs
        ),
    )(flat_params, xt)

    # (n_rows_pad, 128) -> (B, 1): sample s sits at (s // 128, s % 128).
    return out.reshape(B_pad)[:B].reshape(B, 1)


def make_params(key):
    """Deterministic init matching torch.nn.Linear shapes: W (out, in), b (out,)."""
    params = []
    for fin, fout in LAYER_DIMS:
        key, kw, kb = jax.random.split(key, 3)
        bound = 1.0 / float(np.sqrt(fin))
        w = jax.random.uniform(kw, (fout, fin), jnp.float32, -bound, bound)
        b = jax.random.uniform(kb, (fout,), jnp.float32, -bound, bound)
        params.append((w, b))
    return params


def reference_forward(x, params):
    h = x.astype(jnp.float32)
    for w, b in params:
        h = jax.nn.sigmoid(h @ w.T + b)
    return h


if __name__ == "__main__":
    key = jax.random.PRNGKey(0)
    kx1, kx2, kx3, kp = jax.random.split(key, 4)
    params = make_params(kp)

    # 1) Small batch matching the module's natural input: (8, 8) -> one tiny block.
    x1 = jax.random.normal(kx1, (8, 8), jnp.float32)
    o1 = jax.block_until_ready(mlp_forward(x1, params))
    r1 = reference_forward(x1, params)
    assert o1.shape == (8, 1)
    assert jnp.allclose(o1, r1, atol=1e-5, rtol=1e-5)

    # 2) Non-multiple-of-128 batch -> padded tail lanes, still a single block.
    x2 = jax.random.normal(kx2, (300, 8), jnp.float32)
    o2 = jax.block_until_ready(mlp_forward(x2, params))
    r2 = reference_forward(x2, params)
    assert o2.shape == (300, 1)
    assert jnp.allclose(o2, r2, atol=1e-5, rtol=1e-5)

    # 3) Larger batch with a small tile cap -> multi-step grid (8-row blocks).
    x3 = jax.random.normal(kx3, (5000, 8), jnp.float32)
    o3 = jax.block_until_ready(mlp_forward(x3, params, max_tile_rows=8))
    r3 = reference_forward(x3, params)
    assert o3.shape == (5000, 1)
    assert jnp.allclose(o3, r3, atol=1e-5, rtol=1e-5)

    print("KERNEL_OK")
</pallas_src>

<mosaic_0001>
module attributes {stable_mosaic.version = 11 : i64} {
  func.func @mlp_kernel(%arg0: i32, %arg1: memref<95xf32, #tpu.memory_space<smem>>, %arg2: memref<8x1x128xf32, #tpu.memory_space<vmem>>, %arg3: memref<1x128xf32, #tpu.memory_space<vmem>>) attributes {dimension_semantics = [#tpu.dimension_semantics<parallel>], iteration_bounds = array<i64: 1>, scalar_prefetch = 0 : i64, scratch_operands = 0 : i64, tpu.core_type = #tpu.core_type<tc>, window_params = [{transform_indices = @transform_0, window_bounds = array<i64: 95>}, {transform_indices = @transform_1, window_bounds = array<i64: 8, 1, 128>}, {transform_indices = @transform_2, window_bounds = array<i64: 1, 128>}]} {
    %c0 = arith.constant 0 : index
    %c0_0 = arith.constant 0 : index
    %c0_1 = arith.constant 0 : index
    %0 = vector.load %arg2[%c0, %c0_0, %c0_1] : memref<8x1x128xf32, #tpu.memory_space<vmem>>, vector<1x1x128xf32>
    %1 = vector.shape_cast %0 : vector<1x1x128xf32> to vector<1x128xf32>
    %c1 = arith.constant 1 : index
    %c0_2 = arith.constant 0 : index
    %c0_3 = arith.constant 0 : index
    %2 = vector.load %arg2[%c1, %c0_2, %c0_3] : memref<8x1x128xf32, #tpu.memory_space<vmem>>, vector<1x1x128xf32>
    %3 = vector.shape_cast %2 : vector<1x1x128xf32> to vector<1x128xf32>
    %c2 = arith.constant 2 : index
    %c0_4 = arith.constant 0 : index
    %c0_5 = arith.constant 0 : index
    %4 = vector.load %arg2[%c2, %c0_4, %c0_5] : memref<8x1x128xf32, #tpu.memory_space<vmem>>, vector<1x1x128xf32>
    %5 = vector.shape_cast %4 : vector<1x1x128xf32> to vector<1x128xf32>
    %c3 = arith.constant 3 : index
    %c0_6 = arith.constant 0 : index
    %c0_7 = arith.constant 0 : index
    %6 = vector.load %arg2[%c3, %c0_6, %c0_7] : memref<8x1x128xf32, #tpu.memory_space<vmem>>, vector<1x1x128xf32>
    %7 = vector.shape_cast %6 : vector<1x1x128xf32> to vector<1x128xf32>
    %c4 = arith.constant 4 : index
    %c0_8 = arith.constant 0 : index
    %c0_9 = arith.constant 0 : index
    %8 = vector.load %arg2[%c4, %c0_8, %c0_9] : memref<8x1x128xf32, #tpu.memory_space<vmem>>, vector<1x1x128xf32>
    %9 = vector.shape_cast %8 : vector<1x1x128xf32> to vector<1x128xf32>
    %c5 = arith.constant 5 : index
    %c0_10 = arith.constant 0 : index
    %c0_11 = arith.constant 0 : index
    %10 = vector.load %arg2[%c5, %c0_10, %c0_11] : memref<8x1x128xf32, #tpu.memory_space<vmem>>, vector<1x1x128xf32>
    %11 = vector.shape_cast %10 : vector<1x1x128xf32> to vector<1x128xf32>
    %c6 = arith.constant 6 : index
    %c0_12 = arith.constant 0 : index
    %c0_13 = arith.constant 0 : index
    %12 = vector.load %arg2[%c6, %c0_12, %c0_13] : memref<8x1x128xf32, #tpu.memory_space<vmem>>, vector<1x1x128xf32>
    %13 = vector.shape_cast %12 : vector<1x1x128xf32> to vector<1x128xf32>
    %c7 = arith.constant 7 : index
    %c0_14 = arith.constant 0 : index
    %c0_15 = arith.constant 0 : index
    %14 = vector.load %arg2[%c7, %c0_14, %c0_15] : memref<8x1x128xf32, #tpu.memory_space<vmem>>, vector<1x1x128xf32>
    %15 = vector.shape_cast %14 : vector<1x1x128xf32> to vector<1x128xf32>
    %c0_16 = arith.constant 0 : index
    %16 = memref.load %arg1[%c0_16] : memref<95xf32, #tpu.memory_space<smem>>
    %17 = vector.broadcast %16 : f32 to vector<1x128xf32>
    %18 = arith.mulf %1, %17 : vector<1x128xf32>
    %c48 = arith.constant 48 : index
    %19 = memref.load %arg1[%c48] : memref<95xf32, #tpu.memory_space<smem>>
    %20 = vector.broadcast %19 : f32 to vector<1x128xf32>
    %21 = arith.addf %18, %20 : vector<1x128xf32>
    %c1_17 = arith.constant 1 : index
    %22 = memref.load %arg1[%c1_17] : memref<95xf32, #tpu.memory_space<smem>>
    %23 = vector.broadcast %22 : f32 to vector<1x128xf32>
    %24 = arith.mulf %3, %23 : vector<1x128xf32>
    %25 = arith.addf %21, %24 : vector<1x128xf32>
    %c2_18 = arith.constant 2 : index
    %26 = memref.load %arg1[%c2_18] : memref<95xf32, #tpu.memory_space<smem>>
    %27 = vector.broadcast %26 : f32 to vector<1x128xf32>
    %28 = arith.mulf %5, %27 : vector<1x128xf32>
    %29 = arith.addf %25, %28 : vector<1x128xf32>
    %c3_19 = arith.constant 3 : index
    %30 = memref.load %arg1[%c3_19] : memref<95xf32, #tpu.memory_space<smem>>
    %31 = vector.broadcast %30 : f32 to vector<1x128xf32>
    %32 = arith.mulf %7, %31 : vector<1x128xf32>
    %33 = arith.addf %29, %32 : vector<1x128xf32>
    %c4_20 = arith.constant 4 : index
    %34 = memref.load %arg1[%c4_20] : memref<95xf32, #tpu.memory_space<smem>>
    %35 = vector.broadcast %34 : f32 to vector<1x128xf32>
    %36 = arith.mulf %9, %35 : vector<1x128xf32>
    %37 = arith.addf %33, %36 : vector<1x128xf32>
    %c5_21 = arith.constant 5 : index
    %38 = memref.load %arg1[%c5_21] : memref<95xf32, #tpu.memory_space<smem>>
    %39 = vector.broadcast %38 : f32 to vector<1x128xf32>
    %40 = arith.mulf %11, %39 : vector<1x128xf32>
    %41 = arith.addf %37, %40 : vector<1x128xf32>
    %c6_22 = arith.constant 6 : index
    %42 = memref.load %arg1[%c6_22] : memref<95xf32, #tpu.memory_space<smem>>
    %43 = vector.broadcast %42 : f32 to vector<1x128xf32>
    %44 = arith.mulf %13, %43 : vector<1x128xf32>
    %45 = arith.addf %41, %44 : vector<1x128xf32>
    %c7_23 = arith.constant 7 : index
    %46 = memref.load %arg1[%c7_23] : memref<95xf32, #tpu.memory_space<smem>>
    %47 = vector.broadcast %46 : f32 to vector<1x128xf32>
    %48 = arith.mulf %15, %47 : vector<1x128xf32>
    %49 = arith.addf %45, %48 : vector<1x128xf32>
    %50 = math.tanh %49 : vector<1x128xf32>
    %c8 = arith.constant 8 : index
    %51 = memref.load %arg1[%c8] : memref<95xf32, #tpu.memory_space<smem>>
    %52 = vector.broadcast %51 : f32 to vector<1x128xf32>
    %53 = arith.mulf %1, %52 : vector<1x128xf32>
    %c49 = arith.constant 49 : index
    %54 = memref.load %arg1[%c49] : memref<95xf32, #tpu.memory_space<smem>>
    %55 = vector.broadcast %54 : f32 to vector<1x128xf32>
    %56 = arith.addf %53, %55 : vector<1x128xf32>
    %c9 = arith.constant 9 : index
    %57 = memref.load %arg1[%c9] : memref<95xf32, #tpu.memory_space<smem>>
    %58 = vector.broadcast %57 : f32 to vector<1x128xf32>
    %59 = arith.mulf %3, %58 : vector<1x128xf32>
    %60 = arith.addf %56, %59 : vector<1x128xf32>
    %c10 = arith.constant 10 : index
    %61 = memref.load %arg1[%c10] : memref<95xf32, #tpu.memory_space<smem>>
    %62 = vector.broadcast %61 : f32 to vector<1x128xf32>
    %63 = arith.mulf %5, %62 : vector<1x128xf32>
    %64 = arith.addf %60, %63 : vector<1x128xf32>
    %c11 = arith.constant 11 : index
    %65 = memref.load %arg1[%c11] : memref<95xf32, #tpu.memory_space<smem>>
    %66 = vector.broadcast %65 : f32 to vector<1x128xf32>
    %67 = arith.mulf %7, %66 : vector<1x128xf32>
    %68 = arith.addf %64, %67 : vector<1x128xf32>
    %c12 = arith.constant 12 : index
    %69 = memref.load %arg1[%c12] : memref<95xf32, #tpu.memory_space<smem>>
    %70 = vector.broadcast %69 : f32 to vector<1x128xf32>
    %71 = arith.mulf %9, %70 : vector<1x128xf32>
    %72 = arith.addf %68, %71 : vector<1x128xf32>
    %c13 = arith.constant 13 : index
    %73 = memref.load %arg1[%c13] : memref<95xf32, #tpu.memory_space<smem>>
    %74 = vector.broadcast %73 : f32 to vector<1x128xf32>
    %75 = arith.mulf %11, %74 : vector<1x128xf32>
    %76 = arith.addf %72, %75 : vector<1x128xf32>
    %c14 = arith.constant 14 : index
    %77 = memref.load %arg1[%c14] : memref<95xf32, #tpu.memory_space<smem>>
    %78 = vector.broadcast %77 : f32 to vector<1x128xf32>
    %79 = arith.mulf %13, %78 : vector<1x128xf32>
    %80 = arith.addf %76, %79 : vector<1x128xf32>
    %c15 = arith.constant 15 : index
    %81 = memref.load %arg1[%c15] : memref<95xf32, #tpu.memory_space<smem>>
    %82 = vector.broadcast %81 : f32 to vector<1x128xf32>
    %83 = arith.mulf %15, %82 : vector<1x128xf32>
    %84 = arith.addf %80, %83 : vector<1x128xf32>
    %85 = math.tanh %84 : vector<1x128xf32>
    %c16 = arith.constant 16 : index
    %86 = memref.load %arg1[%c16] : memref<95xf32, #tpu.memory_space<smem>>
    %87 = vector.broadcast %86 : f32 to vector<1x128xf32>
    %88 = arith.mulf %1, %87 : vector<1x128xf32>
    %c50 = arith.constant 50 : index
    %89 = memref.load %arg1[%c50] : memref<95xf32, #tpu.memory_space<smem>>
    %90 = vector.broadcast %89 : f32 to vector<1x128xf32>
    %91 = arith.addf %88, %90 : vector<1x128xf32>
    %c17 = arith.constant 17 : index
    %92 = memref.load %arg1[%c17] : memref<95xf32, #tpu.memory_space<smem>>
    %93 = vector.broadcast %92 : f32 to vector<1x128xf32>
    %94 = arith.mulf %3, %93 : vector<1x128xf32>
    %95 = arith.addf %91, %94 : vector<1x128xf32>
    %c18 = arith.constant 18 : index
    %96 = memref.load %arg1[%c18] : memref<95xf32, #tpu.memory_space<smem>>
    %97 = vector.broadcast %96 : f32 to vector<1x128xf32>
    %98 = arith.mulf %5, %97 : vector<1x128xf32>
    %99 = arith.addf %95, %98 : vector<1x128xf32>
    %c19 = arith.constant 19 : index
    %100 = memref.load %arg1[%c19] : memref<95xf32, #tpu.memory_space<smem>>
    %101 = vector.broadcast %100 : f32 to vector<1x128xf32>
    %102 = arith.mulf %7, %101 : vector<1x128xf32>
    %103 = arith.addf %99, %102 : vector<1x128xf32>
    %c20 = arith.constant 20 : index
    %104 = memref.load %arg1[%c20] : memref<95xf32, #tpu.memory_space<smem>>
    %105 = vector.broadcast %104 : f32 to vector<1x128xf32>
    %106 = arith.mulf %9, %105 : vector<1x128xf32>
    %107 = arith.addf %103, %106 : vector<1x128xf32>
    %c21 = arith.constant 21 : index
    %108 = memref.load %arg1[%c21] : memref<95xf32, #tpu.memory_space<smem>>
    %109 = vector.broadcast %108 : f32 to vector<1x128xf32>
    %110 = arith.mulf %11, %109 : vector<1x128xf32>
    %111 = arith.addf %107, %110 : vector<1x128xf32>
    %c22 = arith.constant 22 : index
    %112 = memref.load %arg1[%c22] : memref<95xf32, #tpu.memory_space<smem>>
    %113 = vector.broadcast %112 : f32 to vector<1x128xf32>
    %114 = arith.mulf %13, %113 : vector<1x128xf32>
    %115 = arith.addf %111, %114 : vector<1x128xf32>
    %c23 = arith.constant 23 : index
    %116 = memref.load %arg1[%c23] : memref<95xf32, #tpu.memory_space<smem>>
    %117 = vector.broadcast %116 : f32 to vector<1x128xf32>
    %118 = arith.mulf %15, %117 : vector<1x128xf32>
    %119 = arith.addf %115, %118 : vector<1x128xf32>
    %120 = math.tanh %119 : vector<1x128xf32>
    %c24 = arith.constant 24 : index
    %121 = memref.load %arg1[%c24] : memref<95xf32, #tpu.memory_space<smem>>
    %122 = vector.broadcast %121 : f32 to vector<1x128xf32>
    %123 = arith.mulf %1, %122 : vector<1x128xf32>
    %c51 = arith.constant 51 : index
    %124 = memref.load %arg1[%c51] : memref<95xf32, #tpu.memory_space<smem>>
    %125 = vector.broadcast %124 : f32 to vector<1x128xf32>
    %126 = arith.addf %123, %125 : vector<1x128xf32>
    %c25 = arith.constant 25 : index
    %127 = memref.load %arg1[%c25] : memref<95xf32, #tpu.memory_space<smem>>
    %128 = vector.broadcast %127 : f32 to vector<1x128xf32>
    %129 = arith.mulf %3, %128 : vector<1x128xf32>
    %130 = arith.addf %126, %129 : vector<1x128xf32>
    %c26 = arith.constant 26 : index
    %131 = memref.load %arg1[%c26] : memref<95xf32, #tpu.memory_space<smem>>
    %132 = vector.broadcast %131 : f32 to vector<1x128xf32>
    %133 = arith.mulf %5, %132 : vector<1x128xf32>
    %134 = arith.addf %130, %133 : vector<1x128xf32>
    %c27 = arith.constant 27 : index
    %135 = memref.load %arg1[%c27] : memref<95xf32, #tpu.memory_space<smem>>
    %136 = vector.broadcast %135 : f32 to vector<1x128xf32>
    %137 = arith.mulf %7, %136 : vector<1x128xf32>
    %138 = arith.addf %134, %137 : vector<1x128xf32>
    %c28 = arith.constant 28 : index
    %139 = memref.load %arg1[%c28] : memref<95xf32, #tpu.memory_space<smem>>
    %140 = vector.broadcast %139 : f32 to vector<1x128xf32>
    %141 = arith.mulf %9, %140 : vector<1x128xf32>
    %142 = arith.addf %138, %141 : vector<1x128xf32>
    %c29 = arith.constant 29 : index
    %143 = memref.load %arg1[%c29] : memref<95xf32, #tpu.memory_space<smem>>
    %144 = vector.broadcast %143 : f32 to vector<1x128xf32>
    %145 = arith.mulf %11, %144 : vector<1x128xf32>
    %146 = arith.addf %142, %145 : vector<1x128xf32>
    %c30 = arith.constant 30 : index
    %147 = memref.load %arg1[%c30] : memref<95xf32, #tpu.memory_space<smem>>
    %148 = vector.broadcast %147 : f32 to vector<1x128xf32>
    %149 = arith.mulf %13, %148 : vector<1x128xf32>
    %150 = arith.addf %146, %149 : vector<1x128xf32>
    %c31 = arith.constant 31 : index
    %151 = memref.load %arg1[%c31] : memref<95xf32, #tpu.memory_space<smem>>
    %152 = vector.broadcast %151 : f32 to vector<1x128xf32>
    %153 = arith.mulf %15, %152 : vector<1x128xf32>
    %154 = arith.addf %150, %153 : vector<1x128xf32>
    %155 = math.tanh %154 : vector<1x128xf32>
    %c32 = arith.constant 32 : index
    %156 = memref.load %arg1[%c32] : memref<95xf32, #tpu.memory_space<smem>>
    %157 = vector.broadcast %156 : f32 to vector<1x128xf32>
    %158 = arith.mulf %1, %157 : vector<1x128xf32>
    %c52 = arith.constant 52 : index
    %159 = memref.load %arg1[%c52] : memref<95xf32, #tpu.memory_space<smem>>
    %160 = vector.broadcast %159 : f32 to vector<1x128xf32>
    %161 = arith.addf %158, %160 : vector<1x128xf32>
    %c33 = arith.constant 33 : index
    %162 = memref.load %arg1[%c33] : memref<95xf32, #tpu.memory_space<smem>>
    %163 = vector.broadcast %162 : f32 to vector<1x128xf32>
    %164 = arith.mulf %3, %163 : vector<1x128xf32>
    %165 = arith.addf %161, %164 : vector<1x128xf32>
    %c34 = arith.constant 34 : index
    %166 = memref.load %arg1[%c34] : memref<95xf32, #tpu.memory_space<smem>>
    %167 = vector.broadcast %166 : f32 to vector<1x128xf32>
    %168 = arith.mulf %5, %167 : vector<1x128xf32>
    %169 = arith.addf %165, %168 : vector<1x128xf32>
    %c35 = arith.constant 35 : index
    %170 = memref.load %arg1[%c35] : memref<95xf32, #tpu.memory_space<smem>>
    %171 = vector.broadcast %170 : f32 to vector<1x128xf32>
    %172 = arith.mulf %7, %171 : vector<1x128xf32>
    %173 = arith.addf %169, %172 : vector<1x128xf32>
    %c36 = arith.constant 36 : index
    %174 = memref.load %arg1[%c36] : memref<95xf32, #tpu.memory_space<smem>>
    %175 = vector.broadcast %174 : f32 to vector<1x128xf32>
    %176 = arith.mulf %9, %175 : vector<1x128xf32>
    %177 = arith.addf %173, %176 : vector<1x128xf32>
    %c37 = arith.constant 37 : index
    %178 = memref.load %arg1[%c37] : memref<95xf32, #tpu.memory_space<smem>>
    %179 = vector.broadcast %178 : f32 to vector<1x128xf32>
    %180 = arith.mulf %11, %179 : vector<1x128xf32>
    %181 = arith.addf %177, %180 : vector<1x128xf32>
    %c38 = arith.constant 38 : index
    %182 = memref.load %arg1[%c38] : memref<95xf32, #tpu.memory_space<smem>>
    %183 = vector.broadcast %182 : f32 to vector<1x128xf32>
    %184 = arith.mulf %13, %183 : vector<1x128xf32>
    %185 = arith.addf %181, %184 : vector<1x128xf32>
    %c39 = arith.constant 39 : index
    %186 = memref.load %arg1[%c39] : memref<95xf32, #tpu.memory_space<smem>>
    %187 = vector.broadcast %186 : f32 to vector<1x128xf32>
    %188 = arith.mulf %15, %187 : vector<1x128xf32>
    %189 = arith.addf %185, %188 : vector<1x128xf32>
    %190 = math.tanh %189 : vector<1x128xf32>
    %c40 = arith.constant 40 : index
    %191 = memref.load %arg1[%c40] : memref<95xf32, #tpu.memory_space<smem>>
    %192 = vector.broadcast %191 : f32 to vector<1x128xf32>
    %193 = arith.mulf %1, %192 : vector<1x128xf32>
    %c53 = arith.constant 53 : index
    %194 = memref.load %arg1[%c53] : memref<95xf32, #tpu.memory_space<smem>>
    %195 = vector.broadcast %194 : f32 to vector<1x128xf32>
    %196 = arith.addf %193, %195 : vector<1x128xf32>
    %c41 = arith.constant 41 : index
    %197 = memref.load %arg1[%c41] : memref<95xf32, #tpu.memory_space<smem>>
    %198 = vector.broadcast %197 : f32 to vector<1x128xf32>
    %199 = arith.mulf %3, %198 : vector<1x128xf32>
    %200 = arith.addf %196, %199 : vector<1x128xf32>
    %c42 = arith.constant 42 : index
    %201 = memref.load %arg1[%c42] : memref<95xf32, #tpu.memory_space<smem>>
    %202 = vector.broadcast %201 : f32 to vector<1x128xf32>
    %203 = arith.mulf %5, %202 : vector<1x128xf32>
    %204 = arith.addf %200, %203 : vector<1x128xf32>
    %c43 = arith.constant 43 : index
    %205 = memref.load %arg1[%c43] : memref<95xf32, #tpu.memory_space<smem>>
    %206 = vector.broadcast %205 : f32 to vector<1x128xf32>
    %207 = arith.mulf %7, %206 : vector<1x128xf32>
    %208 = arith.addf %204, %207 : vector<1x128xf32>
    %c44 = arith.constant 44 : index
    %209 = memref.load %arg1[%c44] : memref<95xf32, #tpu.memory_space<smem>>
    %210 = vector.broadcast %209 : f32 to vector<1x128xf32>
    %211 = arith.mulf %9, %210 : vector<1x128xf32>
    %212 = arith.addf %208, %211 : vector<1x128xf32>
    %c45 = arith.constant 45 : index
    %213 = memref.load %arg1[%c45] : memref<95xf32, #tpu.memory_space<smem>>
    %214 = vector.broadcast %213 : f32 to vector<1x128xf32>
    %215 = arith.mulf %11, %214 : vector<1x128xf32>
    %216 = arith.addf %212, %215 : vector<1x128xf32>
    %c46 = arith.constant 46 : index
    %217 = memref.load %arg1[%c46] : memref<95xf32, #tpu.memory_space<smem>>
    %218 = vector.broadcast %217 : f32 to vector<1x128xf32>
    %219 = arith.mulf %13, %218 : vector<1x128xf32>
    %220 = arith.addf %216, %219 : vector<1x128xf32>
    %c47 = arith.constant 47 : index
    %221 = memref.load %arg1[%c47] : memref<95xf32, #tpu.memory_space<smem>>
    %222 = vector.broadcast %221 : f32 to vector<1x128xf32>
    %223 = arith.mulf %15, %222 : vector<1x128xf32>
    %224 = arith.addf %220, %223 : vector<1x128xf32>
    %225 = math.tanh %224 : vector<1x128xf32>
    %c54 = arith.constant 54 : index
    %226 = memref.load %arg1[%c54] : memref<95xf32, #tpu.memory_space<smem>>
    %227 = vector.broadcast %226 : f32 to vector<1x128xf32>
    %228 = arith.mulf %50, %227 : vector<1x128xf32>
    %c78 = arith.constant 78 : index
    %229 = memref.load %arg1[%c78] : memref<95xf32, #tpu.memory_space<smem>>
    %230 = vector.broadcast %229 : f32 to vector<1x128xf32>
    %231 = arith.addf %228, %230 : vector<1x128xf32>
    %c55 = arith.constant 55 : index
    %232 = memref.load %arg1[%c55] : memref<95xf32, #tpu.memory_space<smem>>
    %233 = vector.broadcast %232 : f32 to vector<1x128xf32>
    %234 = arith.mulf %85, %233 : vector<1x128xf32>
    %235 = arith.addf %231, %234 : vector<1x128xf32>
    %c56 = arith.constant 56 : index
    %236 = memref.load %arg1[%c56] : memref<95xf32, #tpu.memory_space<smem>>
    %237 = vector.broadcast %236 : f32 to vector<1x128xf32>
    %238 = arith.mulf %120, %237 : vector<1x128xf32>
    %239 = arith.addf %235, %238 : vector<1x128xf32>
    %c57 = arith.constant 57 : index
    %240 = memref.load %arg1[%c57] : memref<95xf32, #tpu.memory_space<smem>>
    %241 = vector.broadcast %240 : f32 to vector<1x128xf32>
    %242 = arith.mulf %155, %241 : vector<1x128xf32>
    %243 = arith.addf %239, %242 : vector<1x128xf32>
    %c58 = arith.constant 58 : index
    %244 = memref.load %arg1[%c58] : memref<95xf32, #tpu.memory_space<smem>>
    %245 = vector.broadcast %244 : f32 to vector<1x128xf32>
    %246 = arith.mulf %190, %245 : vector<1x128xf32>
    %247 = arith.addf %243, %246 : vector<1x128xf32>
    %c59 = arith.constant 59 : index
    %248 = memref.load %arg1[%c59] : memref<95xf32, #tpu.memory_space<smem>>
    %249 = vector.broadcast %248 : f32 to vector<1x128xf32>
    %250 = arith.mulf %225, %249 : vector<1x128xf32>
    %251 = arith.addf %247, %250 : vector<1x128xf32>
    %252 = math.tanh %251 : vector<1x128xf32>
    %c60 = arith.constant 60 : index
    %253 = memref.load %arg1[%c60] : memref<95xf32, #tpu.memory_space<smem>>
    %254 = vector.broadcast %253 : f32 to vector<1x128xf32>
    %255 = arith.mulf %50, %254 : vector<1x128xf32>
    %c79 = arith.constant 79 : index
    %256 = memref.load %arg1[%c79] : memref<95xf32, #tpu.memory_space<smem>>
    %257 = vector.broadcast %256 : f32 to vector<1x128xf32>
    %258 = arith.addf %255, %257 : vector<1x128xf32>
    %c61 = arith.constant 61 : index
    %259 = memref.load %arg1[%c61] : memref<95xf32, #tpu.memory_space<smem>>
    %260 = vector.broadcast %259 : f32 to vector<1x128xf32>
    %261 = arith.mulf %85, %260 : vector<1x128xf32>
    %262 = arith.addf %258, %261 : vector<1x128xf32>
    %c62 = arith.constant 62 : index
    %263 = memref.load %arg1[%c62] : memref<95xf32, #tpu.memory_space<smem>>
    %264 = vector.broadcast %263 : f32 to vector<1x128xf32>
    %265 = arith.mulf %120, %264 : vector<1x128xf32>
    %266 = arith.addf %262, %265 : vector<1x128xf32>
    %c63 = arith.constant 63 : index
    %267 = memref.load %arg1[%c63] : memref<95xf32, #tpu.memory_space<smem>>
    %268 = vector.broadcast %267 : f32 to vector<1x128xf32>
    %269 = arith.mulf %155, %268 : vector<1x128xf32>
    %270 = arith.addf %266, %269 : vector<1x128xf32>
    %c64 = arith.constant 64 : index
    %271 = memref.load %arg1[%c64] : memref<95xf32, #tpu.memory_space<smem>>
    %272 = vector.broadcast %271 : f32 to vector<1x128xf32>
    %273 = arith.mulf %190, %272 : vector<1x128xf32>
    %274 = arith.addf %270, %273 : vector<1x128xf32>
    %c65 = arith.constant 65 : index
    %275 = memref.load %arg1[%c65] : memref<95xf32, #tpu.memory_space<smem>>
    %276 = vector.broadcast %275 : f32 to vector<1x128xf32>
    %277 = arith.mulf %225, %276 : vector<1x128xf32>
    %278 = arith.addf %274, %277 : vector<1x128xf32>
    %279 = math.tanh %278 : vector<1x128xf32>
    %c66 = arith.constant 66 : index
    %280 = memref.load %arg1[%c66] : memref<95xf32, #tpu.memory_space<smem>>
    %281 = vector.broadcast %280 : f32 to vector<1x128xf32>
    %282 = arith.mulf %50, %281 : vector<1x128xf32>
    %c80 = arith.constant 80 : index
    %283 = memref.load %arg1[%c80] : memref<95xf32, #tpu.memory_space<smem>>
    %284 = vector.broadcast %283 : f32 to vector<1x128xf32>
    %285 = arith.addf %282, %284 : vector<1x128xf32>
    %c67 = arith.constant 67 : index
    %286 = memref.load %arg1[%c67] : memref<95xf32, #tpu.memory_space<smem>>
    %287 = vector.broadcast %286 : f32 to vector<1x128xf32>
    %288 = arith.mulf %85, %287 : vector<1x128xf32>
    %289 = arith.addf %285, %288 : vector<1x128xf32>
    %c68 = arith.constant 68 : index
    %290 = memref.load %arg1[%c68] : memref<95xf32, #tpu.memory_space<smem>>
    %291 = vector.broadcast %290 : f32 to vector<1x128xf32>
    %292 = arith.mulf %120, %291 : vector<1x128xf32>
    %293 = arith.addf %289, %292 : vector<1x128xf32>
    %c69 = arith.constant 69 : index
    %294 = memref.load %arg1[%c69] : memref<95xf32, #tpu.memory_space<smem>>
    %295 = vector.broadcast %294 : f32 to vector<1x128xf32>
    %296 = arith.mulf %155, %295 : vector<1x128xf32>
    %297 = arith.addf %293, %296 : vector<1x128xf32>
    %c70 = arith.constant 70 : index
    %298 = memref.load %arg1[%c70] : memref<95xf32, #tpu.memory_space<smem>>
    %299 = vector.broadcast %298 : f32 to vector<1x128xf32>
    %300 = arith.mulf %190, %299 : vector<1x128xf32>
    %301 = arith.addf %297, %300 : vector<1x128xf32>
    %c71 = arith.constant 71 : index
    %302 = memref.load %arg1[%c71] : memref<95xf32, #tpu.memory_space<smem>>
    %303 = vector.broadcast %302 : f32 to vector<1x128xf32>
    %304 = arith.mulf %225, %303 : vector<1x128xf32>
    %305 = arith.addf %301, %304 : vector<1x128xf32>
    %306 = math.tanh %305 : vector<1x128xf32>
    %c72 = arith.constant 72 : index
    %307 = memref.load %arg1[%c72] : memref<95xf32, #tpu.memory_space<smem>>
    %308 = vector.broadcast %307 : f32 to vector<1x128xf32>
    %309 = arith.mulf %50, %308 : vector<1x128xf32>
    %c81 = arith.constant 81 : index
    %310 = memref.load %arg1[%c81] : memref<95xf32, #tpu.memory_space<smem>>
    %311 = vector.broadcast %310 : f32 to vector<1x128xf32>
    %312 = arith.addf %309, %311 : vector<1x128xf32>
    %c73 = arith.constant 73 : index
    %313 = memref.load %arg1[%c73] : memref<95xf32, #tpu.memory_space<smem>>
    %314 = vector.broadcast %313 : f32 to vector<1x128xf32>
    %315 = arith.mulf %85, %314 : vector<1x128xf32>
    %316 = arith.addf %312, %315 : vector<1x128xf32>
    %c74 = arith.constant 74 : index
    %317 = memref.load %arg1[%c74] : memref<95xf32, #tpu.memory_space<smem>>
    %318 = vector.broadcast %317 : f32 to vector<1x128xf32>
    %319 = arith.mulf %120, %318 : vector<1x128xf32>
    %320 = arith.addf %316, %319 : vector<1x128xf32>
    %c75 = arith.constant 75 : index
    %321 = memref.load %arg1[%c75] : memref<95xf32, #tpu.memory_space<smem>>
    %322 = vector.broadcast %321 : f32 to vector<1x128xf32>
    %323 = arith.mulf %155, %322 : vector<1x128xf32>
    %324 = arith.addf %320, %323 : vector<1x128xf32>
    %c76 = arith.constant 76 : index
    %325 = memref.load %arg1[%c76] : memref<95xf32, #tpu.memory_space<smem>>
    %326 = vector.broadcast %325 : f32 to vector<1x128xf32>
    %327 = arith.mulf %190, %326 : vector<1x128xf32>
    %328 = arith.addf %324, %327 : vector<1x128xf32>
    %c77 = arith.constant 77 : index
    %329 = memref.load %arg1[%c77] : memref<95xf32, #tpu.memory_space<smem>>
    %330 = vector.broadcast %329 : f32 to vector<1x128xf32>
    %331 = arith.mulf %225, %330 : vector<1x128xf32>
    %332 = arith.addf %328, %331 : vector<1x128xf32>
    %333 = math.tanh %332 : vector<1x128xf32>
    %c82 = arith.constant 82 : index
    %334 = memref.load %arg1[%c82] : memref<95xf32, #tpu.memory_space<smem>>
    %335 = vector.broadcast %334 : f32 to vector<1x128xf32>
    %336 = arith.mulf %252, %335 : vector<1x128xf32>
    %c90 = arith.constant 90 : index
    %337 = memref.load %arg1[%c90] : memref<95xf32, #tpu.memory_space<smem>>
    %338 = vector.broadcast %337 : f32 to vector<1x128xf32>
    %339 = arith.addf %336, %338 : vector<1x128xf32>
    %c83 = arith.constant 83 : index
    %340 = memref.load %arg1[%c83] : memref<95xf32, #tpu.memory_space<smem>>
    %341 = vector.broadcast %340 : f32 to vector<1x128xf32>
    %342 = arith.mulf %279, %341 : vector<1x128xf32>
    %343 = arith.addf %339, %342 : vector<1x128xf32>
    %c84 = arith.constant 84 : index
    %344 = memref.load %arg1[%c84] : memref<95xf32, #tpu.memory_space<smem>>
    %345 = vector.broadcast %344 : f32 to vector<1x128xf32>
    %346 = arith.mulf %306, %345 : vector<1x128xf32>
    %347 = arith.addf %343, %346 : vector<1x128xf32>
    %c85 = arith.constant 85 : index
    %348 = memref.load %arg1[%c85] : memref<95xf32, #tpu.memory_space<smem>>
    %349 = vector.broadcast %348 : f32 to vector<1x128xf32>
    %350 = arith.mulf %333, %349 : vector<1x128xf32>
    %351 = arith.addf %347, %350 : vector<1x128xf32>
    %352 = math.tanh %351 : vector<1x128xf32>
    %c86 = arith.constant 86 : index
    %353 = memref.load %arg1[%c86] : memref<95xf32, #tpu.memory_space<smem>>
    %354 = vector.broadcast %353 : f32 to vector<1x128xf32>
    %355 = arith.mulf %252, %354 : vector<1x128xf32>
    %c91 = arith.constant 91 : index
    %356 = memref.load %arg1[%c91] : memref<95xf32, #tpu.memory_space<smem>>
    %357 = vector.broadcast %356 : f32 to vector<1x128xf32>
    %358 = arith.addf %355, %357 : vector<1x128xf32>
    %c87 = arith.constant 87 : index
    %359 = memref.load %arg1[%c87] : memref<95xf32, #tpu.memory_space<smem>>
    %360 = vector.broadcast %359 : f32 to vector<1x128xf32>
    %361 = arith.mulf %279, %360 : vector<1x128xf32>
    %362 = arith.addf %358, %361 : vector<1x128xf32>
    %c88 = arith.constant 88 : index
    %363 = memref.load %arg1[%c88] : memref<95xf32, #tpu.memory_space<smem>>
    %364 = vector.broadcast %363 : f32 to vector<1x128xf32>
    %365 = arith.mulf %306, %364 : vector<1x128xf32>
    %366 = arith.addf %362, %365 : vector<1x128xf32>
    %c89 = arith.constant 89 : index
    %367 = memref.load %arg1[%c89] : memref<95xf32, #tpu.memory_space<smem>>
    %368 = vector.broadcast %367 : f32 to vector<1x128xf32>
    %369 = arith.mulf %333, %368 : vector<1x128xf32>
    %370 = arith.addf %366, %369 : vector<1x128xf32>
    %371 = math.tanh %370 : vector<1x128xf32>
    %c92 = arith.constant 92 : index
    %372 = memref.load %arg1[%c92] : memref<95xf32, #tpu.memory_space<smem>>
    %373 = vector.broadcast %372 : f32 to vector<1x128xf32>
    %374 = arith.mulf %352, %373 : vector<1x128xf32>
    %c94 = arith.constant 94 : index
    %375 = memref.load %arg1[%c94] : memref<95xf32, #tpu.memory_space<smem>>
    %376 = vector.broadcast %375 : f32 to vector<1x128xf32>
    %377 = arith.addf %374, %376 : vector<1x128xf32>
    %c93 = arith.constant 93 : index
    %378 = memref.load %arg1[%c93] : memref<95xf32, #tpu.memory_space<smem>>
    %379 = vector.broadcast %378 : f32 to vector<1x128xf32>
    %380 = arith.mulf %371, %379 : vector<1x128xf32>
    %381 = arith.addf %377, %380 : vector<1x128xf32>
    %382 = math.tanh %381 : vector<1x128xf32>
    %cst = arith.constant 5.000000e-01 : f32
    %383 = vector.broadcast %cst : f32 to vector<1x128xf32>
    %384 = arith.mulf %382, %383 : vector<1x128xf32>
    %cst_24 = arith.constant 5.000000e-01 : f32
    %385 = vector.broadcast %cst_24 : f32 to vector<1x128xf32>
    %386 = arith.addf %384, %385 : vector<1x128xf32>
    %c0_25 = arith.constant 0 : index
    %c0_26 = arith.constant 0 : index
    %387 = vector.load %arg3[%c0_25, %c0_26] : memref<1x128xf32, #tpu.memory_space<vmem>>, vector<1x128xf32>
    tpu.vector_store %arg3[%c0_25, %c0_26], %386 {strides = array<i32>} : memref<1x128xf32, #tpu.memory_space<vmem>>, vector<1x128xf32>,
    return
  }
  func.func @transform_0(%arg0: i32) -> i32 {
    %c0_i32 = arith.constant 0 : i32
    %c0_i32_0 = arith.constant 0 : i32
    return %c0_i32 : i32
  }
  func.func @transform_1(%arg0: i32) -> (i32, i32, i32) {
    %c0_i32 = arith.constant 0 : i32
    %c0_i32_0 = arith.constant 0 : i32
    %c0_i32_1 = arith.constant 0 : i32
    return %c0_i32, %arg0, %c0_i32_0 : i32, i32, i32
  }
  func.func @transform_2(%arg0: i32) -> (i32, i32) {
    %c0_i32 = arith.constant 0 : i32
    %c0_i32_0 = arith.constant 0 : i32
    return %arg0, %c0_i32 : i32, i32
  }
}

</mosaic_0001>

<bundles_post_ra>
// kernel: tpu_custom_call.1
= control target key start
LH: loop header
LB: loop body
LE: loop exit
PB: predicated region body
PF: predicated region fallthrough
CT: control target
= control target key end

     0   :  { %7 = vsyncpa [#allocation5], 0  ;;  %s998_s0 = inlined_call_operand.hbm [shape: f32[95], index: 0, kind: input, shape index: {}]   ;;  %s999_s1 = inlined_call_operand.hbm [shape: f32[8,1,128], index: 1, kind: input, shape index: {}]   ;;  %s1000_s2 = inlined_call_operand.hbm [shape: f32[1,128], index: 2, kind: output, shape index: {}]  }
   0x1   :  { %8 = vsyncpa [#allocation3], 0 }
   0x2   :  { %9 = vsyncpa [#allocation4], 0  ;;  %s563_s11 = scalar_lea.hbm %s998_s0, 16 }
   0x3   :  { %p564_p0 = scmp.ne.s32.totalorder %s998_s0, %s563_s11  ;;  %p567_p1 = scmp.lt.u32.totalorder %s563_s11, %s998_s0 }
   0x5   :  { %p569_p2 = pnand %p567_p1, %p564_p0 }
   0x7   :  { %572 = shalt.err (!%p569_p2)
}
   0x8   :  { %s623_s16 = smov [#allocation2]   ;;  %s624_s19 = smov [#allocation6]  }
   0x9   :  { %17 = dma.hbm_to_smem %s998_s0, 16, %s623_s16, [#allocation5]  }
   0xa   :  { %s23_s20 = sshll.u32 %s624_s19, 4  ;;  %s573_s23 = scalar_lea.hbm %s999_s1, 128  ;;  %s24_s20 = int_to_ptr.vmem [resolvable:$true] %s23_s20 }
   0xb   :  { %p574_p3 = scmp.ne.s32.totalorder %s999_s1, %s573_s23  ;;  %p577_p4 = scmp.lt.u32.totalorder %s573_s23, %s999_s1 }
   0xd   :  { %p579_p5 = pnand %p577_p4, %p574_p3 }
   0xf   :  { %582 = shalt.err (!%p579_p5)
}
  0x10   :  { %s583_s28 = scalar_lea.vmem %s24_s20, 128  ;;  %p588_p7 = scmp.lt.s32.totalorder %s24_s20, %s24_s20 }
  0x11   :  { %p584_p6 = scmp.ne.s32.totalorder %s24_s20, %s583_s28  ;;  %p589_p8 = scmp.lt.s32.totalorder %s583_s28, %s583_s28 }
  0x13   :  { %p590_p9 = por %p589_p8, %p588_p7 }
  0x15   :  { %p591_p10 = pnand %p590_p9, %p584_p6 }
  0x17   :  { %594 = shalt.err (!%p591_p10)
}
  0x18   :  { %s625_s0 = smov 16   ;;  %s626_s29 = smov 1  }
  0x19   :  { %29 = dma.hbm_to_vmem [thread:$0]  %s999_s1, 128, %s24_s20, [#allocation3], %s625_s0, %s625_s0, %s626_s29  }
  0x1a   :  { %617 = dma.done.wait [#allocation5], 16  }
  0x1b   :  { %618 = vsyncadd [#allocation5], 4294967280 }
  0x1c   :  { %619 = dma.done.wait [#allocation3], 128  }
  0x1d   :  { %620 = vsyncadd [#allocation3], 4294967168 }
  0x1e   :  { %36 = sfence }
  0x1f   :  { %s52_s4 = sld [smem:[#allocation2]]  ;;  %s439_s6 = sld [smem:[#allocation2 + $0x1]]  ;;  %v669_v0 = vld [vmem:[#allocation6] sm:$0x1]  ;;  %v675_v1 = vld [vmem:[#allocation6 + $0x1] sm:$0x1] }
  0x20   :  { %s438_s5 = sld [smem:[#allocation2 + $0x30]]  ;;  %s440_s7 = sld [smem:[#allocation2 + $0x2]]  ;;  %v681_v2 = vld [vmem:[#allocation6 + $0x2] sm:$0x1]  ;;  %v687_v3 = vld [vmem:[#allocation6 + $0x3] sm:$0x1] }
  0x21   :  { %s667_s8 = sld [smem:[#allocation2 + $0x3]]  ;;  %s671_s9 = sld [smem:[#allocation2 + $0x4]]  ;;  %v693_v5 = vld [vmem:[#allocation6 + $0x4] sm:$0x1]  ;;  %v700_v9 = vld [vmem:[#allocation6 + $0x5] sm:$0x1] }
  0x22   :  { %s673_s10 = sld [smem:[#allocation2 + $0x5]]  ;;  %s677_s1 = sld [smem:[#allocation2 + $0x6]]  ;;  %v714_v16 = vld [vmem:[#allocation6 + $0x6] sm:$0x1]  ;;  %v723_v20 = vld [vmem:[#allocation6 + $0x7] sm:$0x1] }
  0x23   :  { %s679_s11 = sld [smem:[#allocation2 + $0x7]]  ;;  %s683_s12 = sld [smem:[#allocation2 + $0x8]] }
  0x24   :  { %s685_s13 = sld [smem:[#allocation2 + $0x31]]  ;;  %s691_s15 = sld [smem:[#allocation2 + $0xa]] }
  0x25   :  { %v53_v4 = vstv %s52_s4  ;;  %s689_s14 = sld [smem:[#allocation2 + $0x9]]  ;;  %v59_v8 = vstv %s439_s6  ;;  %s696_s16 = sld [smem:[#allocation2 + $0xb]] }
  0x26   :  { %v54_v6 = vmul.f32 %v53_v4, %v669_v0  ;;  %v56_v7 = vstv %s438_s5  ;;  %s698_s17 = sld [smem:[#allocation2 + $0xc]]  ;;  %v60_v10 = vmul.f32 %v59_v8, %v675_v1  ;;  %v63_v11 = vstv %s440_s7  ;;  %s704_s18 = sld [smem:[#allocation2 + $0xd]] }
  0x27   :  { %v67_v12 = vstv %s667_s8  ;;  %s706_s19 = sld [smem:[#allocation2 + $0xe]]  ;;  %v64_v14 = vmul.f32 %v63_v11, %v681_v2  ;;  %v71_v15 = vstv %s671_s9  ;;  %s710_s20 = sld [smem:[#allocation2 + $0xf]] }
  0x28   :  { %v57_v13 = vadd.f32 %v56_v7, %v54_v6  ;;  %s712_s21 = sld [smem:[#allocation2 + $0x10]]  ;;  %v68_v17 = vmul.f32 %v67_v12, %v687_v3  ;;  %v75_v18 = vstv %s673_s10  ;;  %v79_v19 = vstv %s677_s1  ;;  %s719_s22 = sld [smem:[#allocation2 + $0x32]] }
  0x29   :  { %s721_s23 = sld [smem:[#allocation2 + $0x11]]  ;;  %v72_v22 = vmul.f32 %v71_v15, %v693_v5  ;;  %v76_v23 = vmul.f32 %v75_v18, %v700_v9  ;;  %v83_v24 = vstv %s679_s11  ;;  %s728_s24 = sld [smem:[#allocation2 + $0x12]]  ;;  %v88_v25 = vstv %s683_s12 }
  0x2a   :  { %v61_v21 = vadd.f32 %v60_v10, %v57_v13  ;;  %s730_s25 = sld [smem:[#allocation2 + $0x13]]  ;;  %v91_v26 = vstv %s685_s13  ;;  %v98_v28 = vstv %s691_s15  ;;  %s736_s26 = sld [smem:[#allocation2 + $0x14]]  ;;  %v80_v30 = vmul.f32 %v79_v19, %v714_v16 }
  0x2b   :  { %v94_v27 = vstv %s689_s14  ;;  %s738_s27 = sld [smem:[#allocation2 + $0x15]]  ;;  %v89_v31 = vmul.f32 %v88_v25, %v669_v0  ;;  %v84_v33 = vmul.f32 %v83_v24, %v723_v20  ;;  %v102_v34 = vstv %s696_s16  ;;  %s747_s28 = sld [smem:[#allocation2 + $0x16]] }
  0x2c   :  { %v65_v29 = vadd.f32 %v64_v14, %v61_v21  ;;  %v95_v32 = vmul.f32 %v94_v27, %v675_v1  ;;  %v106_v35 = vstv %s698_s17  ;;  %v110_v36 = vstv %s704_s18  ;;  %s749_s0 = sld [smem:[#allocation2 + $0x18]]  ;;  %s753_s29 = sld [smem:[#allocation2 + $0x17]] }
  0x2d   :  { %v92_v38 = vadd.f32 %v91_v26, %v89_v31  ;;  %v99_v39 = vmul.f32 %v98_v28, %v681_v2  ;;  %v114_v40 = vstv %s706_s19  ;;  %v103_v41 = vmul.f32 %v102_v34, %v687_v3  ;;  %s759_s30 = sld [smem:[#allocation2 + $0x33]]  ;;  %s761_s3 = sld [smem:[#allocation2 + $0x19]] }
  0x2e   :  { %v69_v37 = vadd.f32 %v68_v17, %v65_v29  ;;  %v107_v42 = vmul.f32 %v106_v35, %v693_v5  ;;  %v111_v43 = vmul.f32 %v110_v36, %v700_v9  ;;  %v123_v44 = vstv %s712_s21  ;;  %s765_s4 = sld [smem:[#allocation2 + $0x1a]]  ;;  %s771_s5 = sld [smem:[#allocation2 + $0x1b]] }
  0x2f   :  { %v96_v46 = vadd.f32 %v95_v32, %v92_v38  ;;  %v118_v47 = vstv %s710_s20  ;;  %v124_v48 = vmul.f32 %v123_v44, %v669_v0  ;;  %v126_v49 = vstv %s719_s22  ;;  %s773_s6 = sld [smem:[#allocation2 + $0x1c]]  ;;  %s780_s7 = sld [smem:[#allocation2 + $0x1d]] }
  0x30   :  { %v73_v45 = vadd.f32 %v72_v22, %v69_v37  ;;  %v129_v50 = vstv %s721_s23  ;;  %v133_v51 = vstv %s728_s24  ;;  %v137_v52 = vstv %s730_s25  ;;  %s783_s8 = sld [smem:[#allocation2 + $0x1e]]  ;;  %s789_s9 = sld [smem:[#allocation2 + $0x20]] }
  0x31   :  { %v100_v54 = vadd.f32 %v99_v39, %v96_v46  ;;  %v127_v55 = vadd.f32 %v126_v49, %v124_v48  ;;  %v130_v56 = vmul.f32 %v129_v50, %v675_v1  ;;  %v115_v57 = vmul.f32 %v114_v40, %v714_v16  ;;  %s791_s10 = sld [smem:[#allocation2 + $0x34]]  ;;  %s795_s1 = sld [smem:[#allocation2 + $0x1f]] }
  0x32   :  { %v77_v53 = vadd.f32 %v76_v23, %v73_v45  ;;  %v134_v58 = vmul.f32 %v133_v51, %v681_v2  ;;  %v141_v59 = vstv %s736_s26  ;;  %v145_v60 = vstv %s738_s27  ;;  %s797_s11 = sld [smem:[#allocation2 + $0x21]]  ;;  %s802_s12 = sld [smem:[#allocation2 + $0x22]] }
  0x33   :  { %v104_v62 = vadd.f32 %v103_v41, %v100_v54  ;;  %v131_v63 = vadd.f32 %v130_v56, %v127_v55  ;;  %v138_v4 = vmul.f32 %v137_v52, %v687_v3  ;;  %v119_v6 = vmul.f32 %v118_v47, %v723_v20  ;;  %s804_s13 = sld [smem:[#allocation2 + $0x23]]  ;;  %s811_s14 = sld [smem:[#allocation2 + $0x24]] }
  0x34   :  { %v81_v61 = vadd.f32 %v80_v30, %v77_v53  ;;  %v142_v7 = vmul.f32 %v141_v59, %v693_v5  ;;  %v149_v8 = vstv %s747_s28  ;;  %v158_v10 = vstv %s749_s0  ;;  %s813_s15 = sld [smem:[#allocation2 + $0x25]]  ;;  %s819_s16 = sld [smem:[#allocation2 + $0x26]] }
  0x35   :  { %v108_v11 = vadd.f32 %v107_v42, %v104_v62  ;;  %v135_v12 = vadd.f32 %v134_v58, %v131_v63  ;;  %v146_v13 = vmul.f32 %v145_v60, %v700_v9  ;;  %v153_v14 = vstv %s753_s29  ;;  %s821_s17 = sld [smem:[#allocation2 + $0x28]]  ;;  %s825_s18 = sld [smem:[#allocation2 + $0x27]] }
  0x36   :  { %v85_v15 = vadd.f32 %v84_v33, %v81_v61  ;;  %v159_v17 = vmul.f32 %v158_v10, %v669_v0  ;;  %v161_v18 = vstv %s759_s30  ;;  %v164_v19 = vstv %s761_s3  ;;  %s827_s19 = sld [smem:[#allocation2 + $0x35]]  ;;  %s832_s20 = sld [smem:[#allocation2 + $0x29]] }
  0x37   :  { %v112_v21 = vadd.f32 %v111_v43, %v108_v11  ;;  %v139_v22 = vadd.f32 %v138_v4, %v135_v12  ;;  %v150_v23 = vmul.f32 %v149_v8, %v714_v16  ;;  %v165_v24 = vmul.f32 %v164_v19, %v675_v1  ;;  %s834_s21 = sld [smem:[#allocation2 + $0x2a]]  ;;  %s838_s22 = sld [smem:[#allocation2 + $0x2b]] }
  0x38   :  { %v162_v25 = vadd.f32 %v161_v18, %v159_v17  ;;  %v168_v26 = vstv %s765_s4  ;;  %v172_v27 = vstv %s771_s5  ;;  %v176_v28 = vstv %s773_s6  ;;  %s843_s23 = sld [smem:[#allocation2 + $0x2c]]  ;;  %s845_s24 = sld [smem:[#allocation2 + $0x2d]] }
  0x39   :  { %v116_v29 = vadd.f32 %v115_v57, %v112_v21  ;;  %v143_v30 = vadd.f32 %v142_v7, %v139_v22  ;;  %v154_v31 = vmul.f32 %v153_v14, %v723_v20  ;;  %v169_v32 = vmul.f32 %v168_v26, %v681_v2  ;;  %s852_s25 = sld [smem:[#allocation2 + $0x2e]]  ;;  %s854_s26 = sld [smem:[#allocation2 + $0x2f]] }
  0x3a   :  { %537 = vtanh.f32 %v85_v15  ;;  %v166_v33 = vadd.f32 %v165_v24, %v162_v25  ;;  %v173_v34 = vmul.f32 %v172_v27, %v687_v3  ;;  %v180_v35 = vstv %s780_s7  ;;  %s858_s27 = sld [smem:[#allocation2 + $0x36]]  ;;  %s865_s0 = sld [smem:[#allocation2 + $0x37]] }
  0x3b   :  { %v120_v36 = vadd.f32 %v119_v6, %v116_v29  ;;  %v147_v37 = vadd.f32 %v146_v13, %v143_v30  ;;  %v177_v38 = vmul.f32 %v176_v28, %v693_v5  ;;  %v184_v39 = vstv %s783_s8  ;;  %s860_s28 = sld [smem:[#allocation2 + $0x4e]]  ;;  %s867_s29 = sld [smem:[#allocation2 + $0x38]] }
  0x3c   :  { %v170_v40 = vadd.f32 %v169_v32, %v166_v33  ;;  %v181_v41 = vmul.f32 %v180_v35, %v700_v9  ;;  %v193_v42 = vstv %s789_s9  ;;  %v196_v43 = vstv %s791_s10  ;;  %s879_s30 = sld [smem:[#allocation2 + $0x3c]]  ;;  %s881_s3 = sld [smem:[#allocation2 + $0x4f]] }
  0x3d   :  { %539 = vtanh.f32 %v120_v36  ;;  %v151_v44 = vadd.f32 %v150_v23, %v147_v37  ;;  %v188_v45 = vstv %s795_s1  ;;  %v194_v46 = vmul.f32 %v193_v42, %v669_v0  ;;  %s886_s4 = sld [smem:[#allocation2 + $0x3d]]  ;;  %s888_s5 = sld [smem:[#allocation2 + $0x3e]] }
  0x3e   :  { %v174_v47 = vadd.f32 %v173_v34, %v170_v40  ;;  %v199_v48 = vstv %s797_s11  ;;  %v203_v49 = vstv %s802_s12  ;;  %v207_v50 = vstv %s804_s13  ;;  %s897_s6 = sld [smem:[#allocation2 + $0x39]]  ;;  %s901_s7 = sld [smem:[#allocation2 + $0x3f]] }
  0x3f   :  { %v155_v51 = vadd.f32 %v154_v31, %v151_v44  ;;  %v197_v52 = vadd.f32 %v196_v43, %v194_v46  ;;  %v200_v53 = vmul.f32 %v199_v48, %v675_v1  ;;  %v204_v54 = vmul.f32 %v203_v49, %v681_v2  ;;  %s903_s8 = sld [smem:[#allocation2 + $0x42]]  ;;  %s909_s9 = sld [smem:[#allocation2 + $0x50]] }
  0x40   :  { %v178_v55 = vadd.f32 %v177_v38, %v174_v47  ;;  %v185_v56 = vmul.f32 %v184_v39, %v714_v16  ;;  %v211_v57 = vstv %s811_s14  ;;  %v215_v58 = vstv %s813_s15  ;;  %s911_s10 = sld [smem:[#allocation2 + $0x43]]  ;;  %s920_s1 = sld [smem:[#allocation2 + $0x44]] }
  0x41   :  { %541 = vtanh.f32 %v155_v51  ;;  %v189_v59 = vmul.f32 %v188_v45, %v723_v20  ;;  %v201_v60 = vadd.f32 %v200_v53, %v197_v52  ;;  %v208_v61 = vmul.f32 %v207_v50, %v687_v3  ;;  %s922_s11 = sld [smem:[#allocation2 + $0x45]]  ;;  %s924_s12 = sld [smem:[#allocation2 + $0x3a]] }
  0x42   :  { %v182_v62 = vadd.f32 %v181_v41, %v178_v55  ;;  %v212_v63 = vmul.f32 %v211_v57, %v693_v5  ;;  %v216_v4 = vmul.f32 %v215_v58, %v700_v9  ;;  %v228_v6 = vstv %s821_s17  ;;  %s931_s13 = sld [smem:[#allocation2 + $0x40]]  ;;  %s933_s14 = sld [smem:[#allocation2 + $0x46]] }
  0x43   :  { %v205_v7 = vadd.f32 %v204_v54, %v201_v60  ;;  %v219_v8 = vstv %s819_s16  ;;  %v223_v10 = vstv %s825_s18  ;;  %v229_v11 = vmul.f32 %v228_v6, %v669_v0  ;;  %s936_s15 = sld [smem:[#allocation2 + $0x48]]  ;;  %s938_s16 = sld [smem:[#allocation2 + $0x49]] }
  0x44   :  { %v872_v12 = vpop.eup %537  ;;  %v186_v13 = vadd.f32 %v185_v56, %v182_v62  ;;  %v231_v14 = vstv %s827_s19  ;;  %v234_v15 = vstv %s832_s20  ;;  %v238_v17 = vstv %s834_s21  ;;  %s941_s17 = sld [smem:[#allocation2 + $0x51]]  ;;  %s943_s18 = sld [smem:[#allocation2 + $0x4a]] }
  0x45   :  { %v209_v18 = vadd.f32 %v208_v61, %v205_v7  ;;  %v232_v19 = vadd.f32 %v231_v14, %v229_v11  ;;  %v235_v21 = vmul.f32 %v234_v15, %v675_v1  ;;  %v239_v22 = vmul.f32 %v238_v17, %v681_v2  ;;  %s948_s19 = sld [smem:[#allocation2 + $0x4b]]  ;;  %s958_s21 = sld [smem:[#allocation2 + $0x4c]] }
  0x46   :  { %v190_v23 = vadd.f32 %v189_v59, %v186_v13  ;;  %v242_v24 = vstv %s838_s22  ;;  %v246_v25 = vstv %s843_s23  ;;  %v250_v0 = vstv %s845_s24  ;;  %s954_s20 = sld [smem:[#allocation2 + $0x3b]]  ;;  %s960_s22 = sld [smem:[#allocation2 + $0x41]] }
  0x47   :  { %v890_v26 = vpop.eup %539  ;;  %v213_v1 = vadd.f32 %v212_v63, %v209_v18  ;;  %v220_v2 = vmul.f32 %v219_v8, %v714_v16  ;;  %v236_v27 = vadd.f32 %v235_v21, %v232_v19  ;;  %v243_v28 = vmul.f32 %v242_v24, %v687_v3  ;;  %s963_s23 = sld [smem:[#allocation2 + $0x47]]  ;;  %s966_s24 = sld [smem:[#allocation2 + $0x4d]] }
  0x48   :  { %543 = vtanh.f32 %v190_v23  ;;  %v224_v29 = vmul.f32 %v223_v10, %v723_v20  ;;  %v247_v30 = vmul.f32 %v246_v25, %v693_v5  ;;  %v251_v31 = vmul.f32 %v250_v0, %v700_v9 }
  0x49   :  { %v217_v32 = vadd.f32 %v216_v4, %v213_v1  ;;  %v240_v33 = vadd.f32 %v239_v22, %v236_v27  ;;  %v254_v34 = vstv %s852_s25  ;;  %v258_v35 = vstv %s854_s26  ;;  %s519_s25 = sld [smem:[#allocation2 + $0x52]] }
  0x4a   :  { %v263_v36 = vstv %s858_s27  ;;  %v266_v37 = vstv %s860_s28  ;;  %v269_v3 = vstv %s865_s0  ;;  %v273_v38 = vstv %s867_s29  ;;  %s983_s26 = sld [smem:[#allocation2 + $0x5a]]  ;;  %s521_s27 = sld [smem:[#allocation2 + $0x53]] }
  0x4b   :  { %v913_v5 = vpop.eup %541  ;;  %v221_v9 = vadd.f32 %v220_v2, %v217_v32  ;;  %v244_v39 = vadd.f32 %v243_v28, %v240_v33  ;;  %v264_v40 = vmul.f32 %v872_v12, %v263_v36  ;;  %v270_v41 = vmul.f32 %v890_v26, %v269_v3  ;;  %s524_s28 = sld [smem:[#allocation2 + $0x56]]  ;;  %s522_s0 = sld [smem:[#allocation2 + $0x54]] }
  0x4c   :  { %v255_v42 = vmul.f32 %v254_v34, %v714_v16  ;;  %v259_v43 = vmul.f32 %v258_v35, %v723_v20  ;;  %v274_v44 = vmul.f32 %v913_v5, %v273_v38  ;;  %v290_v48 = vstv %s879_s30  ;;  %s526_s29 = sld [smem:[#allocation2 + $0x57]]  ;;  %s525_s30 = sld [smem:[#allocation2 + $0x5b]] }
  0x4d   :  { %v225_v45 = vadd.f32 %v224_v29, %v221_v9  ;;  %v248_v46 = vadd.f32 %v247_v30, %v244_v39  ;;  %v267_v47 = vadd.f32 %v266_v37, %v264_v40  ;;  %v291_v49 = vmul.f32 %v872_v12, %v290_v48 }
  0x4e   :  { %v293_v50 = vstv %s881_s3  ;;  %v296_v51 = vstv %s886_s4  ;;  %v300_v16 = vstv %s888_s5  ;;  %v277_v54 = vstv %s897_s6  ;;  %s527_s3 = sld [smem:[#allocation2 + $0x58]]  ;;  %s523_s4 = sld [smem:[#allocation2 + $0x55]] }
  0x4f   :  { %545 = vtanh.f32 %v225_v45  ;;  %v252_v20 = vadd.f32 %v251_v31, %v248_v46  ;;  %v271_v52 = vadd.f32 %v270_v41, %v267_v47  ;;  %v297_v53 = vmul.f32 %v890_v26, %v296_v51  ;;  %s528_s5 = sld [smem:[#allocation2 + $0x59]]  ;;  %s529_s6 = sld [smem:[#allocation2 + $0x5c]] }
  0x50   :  { %v294_v55 = vadd.f32 %v293_v50, %v291_v49  ;;  %v301_v57 = vmul.f32 %v913_v5, %v300_v16  ;;  %v304_v58 = vstv %s901_s7  ;;  %v317_v59 = vstv %s903_s8  ;;  %s531_s7 = sld [smem:[#allocation2 + $0x5d]]  ;;  %s530_s8 = sld [smem:[#allocation2 + $0x5e]] }
  0x51   :  { %v256_v56 = vadd.f32 %v255_v42, %v252_v20  ;;  %v318_v62 = vmul.f32 %v872_v12, %v317_v59  ;;  %v320_v63 = vstv %s909_s9  ;;  %v323_v4 = vstv %s911_s10  ;;  %s627_s9 = smov [#allocation7]  }
  0x52   :  { %v544_v60 = vpop.eup %543  ;;  %v298_v61 = vadd.f32 %v297_v53, %v294_v55  ;;  %v275_v7 = vadd.f32 %v274_v44, %v271_v52  ;;  %v324_v8 = vmul.f32 %v890_v26, %v323_v4  ;;  %v327_v13 = vstv %s920_s1  ;;  %s428_s10 = sshll.u32 %s627_s9, 4  ;;  %s429_s10 = int_to_ptr.vmem [resolvable:$true] %s428_s10 }
  0x53   :  { %v260_v6 = vadd.f32 %v259_v43, %v256_v56  ;;  %v278_v10 = vmul.f32 %v544_v60, %v277_v54  ;;  %v321_v11 = vadd.f32 %v320_v63, %v318_v62  ;;  %v331_v14 = vstv %s922_s11  ;;  %s595_s1 = scalar_lea.vmem %s429_s10, 16  ;;  %s599_s11 = scalar_lea.vmem %s429_s10, 32 }
  0x54   :  { %v302_v15 = vadd.f32 %v301_v57, %v298_v61  ;;  %v305_v17 = vmul.f32 %v544_v60, %v304_v58  ;;  %v328_v18 = vmul.f32 %v913_v5, %v327_v13  ;;  %v281_v19 = vstv %s924_s12  ;;  %p596_p11 = scmp.ne.s32.totalorder %s429_s10, %s595_s1  ;;  %p600_p12 = scmp.lt.s32.totalorder %s429_s10, %s429_s10 }
  0x55   :  { %547 = vtanh.f32 %v260_v6  ;;  %v325_v21 = vadd.f32 %v324_v8, %v321_v11  ;;  %v332_v22 = vmul.f32 %v544_v60, %v331_v14  ;;  %v308_v23 = vstv %s931_s13  ;;  %p601_p13 = scmp.lt.s32.totalorder %s599_s11, %s595_s1 }
  0x56   :  { %v335_v24 = vstv %s933_s14  ;;  %v344_v25 = vstv %s936_s15  ;;  %v350_v0 = vstv %s938_s16  ;;  %v347_v27 = vstv %s941_s17 }
  0x57   :  { %v329_v1 = vadd.f32 %v328_v18, %v325_v21  ;;  %v345_v2 = vmul.f32 %v872_v12, %v344_v25  ;;  %v354_v28 = vstv %s943_s18  ;;  %v279_v30 = vadd.f32 %v278_v10, %v275_v7  ;;  %p602_p0 = por %p601_p13, %p600_p12 }
  0x58   :  { %v306_v31 = vadd.f32 %v305_v17, %v302_v15  ;;  %v351_v32 = vmul.f32 %v890_v26, %v350_v0  ;;  %v358_v33 = vstv %s948_s19  ;;  %v355_v38 = vmul.f32 %v913_v5, %v354_v28 }
  0x59   :  { %v546_v29 = vpop.eup %545  ;;  %v333_v36 = vadd.f32 %v332_v22, %v329_v1  ;;  %v348_v3 = vadd.f32 %v347_v27, %v345_v2  ;;  %v285_v9 = vstv %s954_s20  ;;  %v362_v12 = vstv %s958_s21  ;;  %p603_p1 = pnand %p602_p0, %p596_p11 }
  0x5a   :  { %v282_v34 = vmul.f32 %v546_v29, %v281_v19  ;;  %v309_v35 = vmul.f32 %v546_v29, %v308_v23  ;;  %v336_v37 = vmul.f32 %v546_v29, %v335_v24  ;;  %v312_v39 = vstv %s960_s22 }
  0x5b   :  { %v339_v40 = vstv %s963_s23  ;;  %v352_v41 = vadd.f32 %v351_v32, %v348_v3  ;;  %v359_v42 = vmul.f32 %v544_v60, %v358_v33  ;;  %v366_v46 = vstv %s966_s24 }
  0x5c   :  { %v283_v43 = vadd.f32 %v282_v34, %v279_v30  ;;  %v310_v44 = vadd.f32 %v309_v35, %v306_v31  ;;  %v337_v45 = vadd.f32 %v336_v37, %v333_v36  ;;  %v363_v48 = vmul.f32 %v546_v29, %v362_v12 }
  0x5d   :  { %v356_v47 = vadd.f32 %v355_v38, %v352_v41  ;;  %v371_v56 = vstv %s519_s25  ;;  %v390_v57 = vstv %s524_s28  ;;  %v377_v58 = vstv %s521_s27 }
  0x5e   :  { %v396_v59 = vstv %s526_s29  ;;  %v374_v61 = vstv %s983_s26  ;;  %v381_v62 = vstv %s522_s0  ;;  %v393_v63 = vstv %s525_s30 }
  0x5f   :  { %v548_v26 = vpop.eup %547  ;;  %v360_v16 = vadd.f32 %v359_v42, %v356_v47  ;;  %v400_v4 = vstv %s527_s3  ;;  %v385_v13 = vstv %s523_s4  ;;  %v404_v15 = vstv %s528_s5 }
  0x60   :  { %v286_v49 = vmul.f32 %v548_v26, %v285_v9  ;;  %v313_v50 = vmul.f32 %v548_v26, %v312_v39  ;;  %v340_v51 = vmul.f32 %v548_v26, %v339_v40  ;;  %v367_v20 = vmul.f32 %v548_v26, %v366_v46 }
  0x61   :  { %v364_v54 = vadd.f32 %v363_v48, %v360_v16  ;;  %v409_v29 = vstv %s529_s6  ;;  %v415_v30 = vstv %s531_s7  ;;  %v412_v32 = vstv %s530_s8 }
  0x62   :  { %v287_v52 = vadd.f32 %v286_v49, %v283_v43  ;;  %v314_v5 = vadd.f32 %v313_v50, %v310_v44  ;;  %v341_v53 = vadd.f32 %v340_v51, %v337_v45 }
  0x63   :  { %v368_v55 = vadd.f32 %v367_v20, %v364_v54 }
  0x64   :  { %549 = vtanh.f32 %v287_v52 }
  0x65   :  { %551 = vtanh.f32 %v314_v5 }
  0x66   :  { %553 = vtanh.f32 %v341_v53 }
  0x67   :  { %555 = vtanh.f32 %v368_v55 }
  0x6e   :  { %v550_v60 = vpop.eup %549 }
  0x6f   :  { %v552_v6 = vpop.eup %551  ;;  %v372_v7 = vmul.f32 %v550_v60, %v371_v56  ;;  %v391_v8 = vmul.f32 %v550_v60, %v390_v57 }
  0x70   :  { %v554_v10 = vpop.eup %553  ;;  %v378_v11 = vmul.f32 %v552_v6, %v377_v58  ;;  %v397_v14 = vmul.f32 %v552_v6, %v396_v59 }
  0x71   :  { %v556_v17 = vpop.eup %555  ;;  %v375_v18 = vadd.f32 %v374_v61, %v372_v7  ;;  %v382_v19 = vmul.f32 %v554_v10, %v381_v62  ;;  %v394_v21 = vadd.f32 %v393_v63, %v391_v8  ;;  %v401_v22 = vmul.f32 %v554_v10, %v400_v4 }
  0x72   :  { %v386_v24 = vmul.f32 %v556_v17, %v385_v13  ;;  %v405_v0 = vmul.f32 %v556_v17, %v404_v15 }
  0x73   :  { %v379_v23 = vadd.f32 %v378_v11, %v375_v18  ;;  %v398_v25 = vadd.f32 %v397_v14, %v394_v21 }
  0x75   :  { %v383_v1 = vadd.f32 %v382_v19, %v379_v23  ;;  %v402_v2 = vadd.f32 %v401_v22, %v398_v25 }
  0x77   :  { %v387_v27 = vadd.f32 %v386_v24, %v383_v1  ;;  %v406_v28 = vadd.f32 %v405_v0, %v402_v2 }
  0x79   :  { %557 = vtanh.f32 %v387_v27 }
  0x7a   :  { %559 = vtanh.f32 %v406_v28 }
  0x83   :  { %v558_v31 = vpop.eup %557 }
  0x84   :  { %v560_v33 = vpop.eup %559  ;;  %v410_v34 = vmul.f32 %v558_v31, %v409_v29 }
  0x85   :  { %v416_v35 = vmul.f32 %v560_v33, %v415_v30 }
  0x86   :  { %v413_v36 = vadd.f32 %v412_v32, %v410_v34 }
  0x88   :  { %v417_v37 = vadd.f32 %v416_v35, %v413_v36 }
  0x8a   :  { %561 = vtanh.f32 %v417_v37 }
  0x94   :  { %v562_v3 = vpop.eup %561 }
  0x95   :  { %v419_v38 = vmul.f32 0.5, %v562_v3 }
  0x97   :  { %v420_v9 = vadd.f32 0.5, %v419_v38 }
  0x99   :  { %421 = vst [vmem:[#allocation7] sm:$0x1] %v420_v9 }
  0x9a   :  { %606 = shalt.err (!%p603_p1)
}
  0x9b   :  { %s607_s14 = scalar_lea.hbm %s1000_s2, 16 }
  0x9c   :  { %p608_p2 = scmp.ne.s32.totalorder %s1000_s2, %s607_s14  ;;  %p611_p3 = scmp.lt.u32.totalorder %s607_s14, %s1000_s2 }
  0x9e   :  { %p613_p4 = pnand %p611_p3, %p608_p2 }
  0xa0   :  { %616 = shalt.err (!%p613_p4)
}
  0xa1   :  { %431 = dma.vmem_to_hbm [thread:$0]  %s429_s10, 16, %s1000_s2, [#allocation4]  }
  0xa2   :  { %621 = dma.done.wait [#allocation4], 16  }
  0xa3   :  { %622 = vsyncadd [#allocation4], 4294967280 }
  0xa4   :  { %435 = vsyncpa [#allocation3], 1 }
  0xa5   :  { %436 = vsyncpa [#allocation4], 1 }
  0xa6   :  { %437 = vsyncpa [#allocation5], 1 }

</bundles_post_ra>
